<compile_context>
chip_gen: v5e
topology: v5e:2x2
jax: 0.10.0
libtpu: 0.0.40
codegen_flags: <defaults>
</compile_context>

<pallas_src>
import functools

import jax
import jax.numpy as jnp
from jax.experimental import pallas as pl
from jax.experimental.pallas import tpu as pltpu

TEMP = 0.4
EPS = 1e-10

_MIN_BLOCK_BYTES = 1 << 20      # keep per-core blocks >= ~1 MiB when splitting for megacore
_PALLAS_MIN_BYTES = 1 << 20     # below this, plain XLA sigmoid is cheaper than a pallas_call


def _cdiv(a, b):
    return (a + b - 1) // b


def _round_up(x, m):
    return _cdiv(x, m) * m


def _vmem_budget():
    """(vmem_limit_bytes, target_block_bytes) sized per TPU generation."""
    try:
        cap = int(pltpu.get_tpu_info().vmem_capacity_bytes)
    except Exception:
        cap = 64 << 20                      # conservative: v7x-sized fallback
    vmem_limit = (cap * 3) // 4             # 48 MiB on v7x, 96 MiB on v5e/v6e
    target = min(16 << 20, max(1 << 20, vmem_limit // 6))   # 8 MiB v7x, 16 MiB v5e/v6e
    return vmem_limit, target


def _choose_tm(n_rows, n_cols, itemsize, target_block_bytes):
    """Row-tile size: near-full last block, sublane/packing aligned, megacore-splittable."""
    sub = 16 if itemsize < 4 else 8         # 16-bit dtypes pack (16, 128) per vreg
    row_bytes = max(1, n_cols * itemsize)
    target_rows = max(sub, target_block_bytes // row_bytes)
    n_blocks = max(1, _cdiv(n_rows, target_rows))
    # v7x megacore: guarantee >= 2 grid steps when each half stays >= _MIN_BLOCK_BYTES.
    if n_blocks == 1 and n_rows * row_bytes >= 2 * _MIN_BLOCK_BYTES:
        n_blocks = 2
    tm = _round_up(_cdiv(n_rows, n_blocks), sub)
    return max(sub, min(tm, _round_up(n_rows, sub)))


# ---------------------------------------------------------------------------
# Kernels — pure streaming elementwise, HBM-bandwidth bound.
# ---------------------------------------------------------------------------
def _sigmoid_val(z, use_tanh):
    if use_tanh:
        # Single EUP transcendental; keeps bf16 I/O HBM-bound on v7x.
        return 0.5 * (jnp.tanh(0.5 * z) + 1.0)
    return jax.nn.sigmoid(z)


def _gumbel_sigmoid_train_kernel(x_ref, noise_ref, o_ref, *, inv_temp, use_tanh):
    # noise_ref is a pre-scaled (1, C) row (noise / temp); broadcasts over the
    # (tm, C) input tile along the sublane (batch) axis.
    z = x_ref[...].astype(jnp.float32) * inv_temp + noise_ref[...]
    o_ref[...] = _sigmoid_val(z, use_tanh).astype(o_ref.dtype)


def _sigmoid_kernel(x_ref, o_ref, *, use_tanh):
    z = x_ref[...].astype(jnp.float32)
    o_ref[...] = _sigmoid_val(z, use_tanh).astype(o_ref.dtype)


# ---------------------------------------------------------------------------
# Wrapper
# ---------------------------------------------------------------------------
def gumbel_sigmoid(x, key=None, *, temp=TEMP, eps=EPS, training=True, use_pallas=None):
    """x: (N, C) float array.

    training=True : sigmoid((x + noise) / temp), noise derived from `key` via two
                    U[0,1) draws of shape (C,) (same formula as the PyTorch module;
                    only the RNG stream differs from torch.rand).
    training=False: sigmoid(x).
    use_pallas    : None = auto (XLA fallback for tiny inputs), True/False = force.
    """
    N, C = x.shape
    itemsize = jnp.dtype(x.dtype).itemsize
    if use_pallas is None:
        use_pallas = N * C * itemsize >= _PALLAS_MIN_BYTES

    noise_scaled = None
    if training:
        # Hoisted one-shot noise computation (tiny (1, C) row) — never in the hot loop.
        k1, k2 = jax.random.split(key)
        u1 = jax.random.uniform(k1, (1, C), dtype=jnp.float32)
        u2 = jax.random.uniform(k2, (1, C), dtype=jnp.float32)
        noise = -jnp.log(jnp.log(u2 + eps) / jnp.log(u1 + eps) + eps)
        noise_scaled = noise * (1.0 / temp)          # pre-divide by temp

    if not use_pallas:
        # Tiny arrays: a single-block pallas_call is pure call/DMA overhead.
        if training:
            z = x.astype(jnp.float32) * (1.0 / temp) + noise_scaled
        else:
            z = x.astype(jnp.float32)
        return jax.nn.sigmoid(z).astype(x.dtype)

    vmem_limit, target_block_bytes = _vmem_budget()
    tm = _choose_tm(N, C, itemsize, target_block_bytes)
    grid = (_cdiv(N, tm),)                            # no padding: last block is masked
    use_tanh = itemsize < 4

    compiler_params = pltpu.CompilerParams(
        dimension_semantics=("parallel",),            # shards across v7x's two TCs
        vmem_limit_bytes=vmem_limit,
    )

    if not training:
        kernel = functools.partial(_sigmoid_kernel, use_tanh=use_tanh)
        return pl.pallas_call(
            kernel,
            out_shape=jax.ShapeDtypeStruct((N, C), x.dtype),
            grid_spec=pltpu.PrefetchScalarGridSpec(
                num_scalar_prefetch=0,
                grid=grid,
                in_specs=[pl.BlockSpec((tm, C), lambda i: (i, 0))],
                out_specs=pl.BlockSpec((tm, C), lambda i: (i, 0)),
            ),
            compiler_params=compiler_params,
        )(x)

    kernel = functools.partial(
        _gumbel_sigmoid_train_kernel, inv_temp=1.0 / temp, use_tanh=use_tanh
    )
    return pl.pallas_call(
        kernel,
        out_shape=jax.ShapeDtypeStruct((N, C), x.dtype),
        grid_spec=pltpu.PrefetchScalarGridSpec(
            num_scalar_prefetch=0,
            grid=grid,
            in_specs=[
                pl.BlockSpec((tm, C), lambda i: (i, 0)),   # x tile (full-extent C)
                pl.BlockSpec((1, C), lambda i: (0, 0)),    # pre-scaled noise row
            ],
            out_specs=pl.BlockSpec((tm, C), lambda i: (i, 0)),
        ),
        compiler_params=compiler_params,
    )(x, noise_scaled)


# ---------------------------------------------------------------------------
# Reference + main
# ---------------------------------------------------------------------------
def _ref(x, key, *, temp=TEMP, eps=EPS, training=True):
    if not training:
        return jax.nn.sigmoid(x.astype(jnp.float32))
    C = x.shape[1]
    k1, k2 = jax.random.split(key)
    u1 = jax.random.uniform(k1, (1, C), dtype=jnp.float32)
    u2 = jax.random.uniform(k2, (1, C), dtype=jnp.float32)
    noise = -jnp.log(jnp.log(u2 + eps) / jnp.log(u1 + eps) + eps)
    return jax.nn.sigmoid((x.astype(jnp.float32) + noise) / temp)


if __name__ == "__main__":
    key = jax.random.PRNGKey(0)
    kx, knoise, kx2, kx3, kx4 = jax.random.split(key, 5)

    # 1) Aligned small shape (kernel path forced).
    N, C = 16, 128
    x = jax.random.normal(kx, (N, C), dtype=jnp.float32)
    out_train = jax.block_until_ready(gumbel_sigmoid(x, knoise, training=True, use_pallas=True))
    out_eval = jax.block_until_ready(gumbel_sigmoid(x, training=False, use_pallas=True))
    assert jnp.allclose(out_train, _ref(x, knoise, training=True), atol=1e-5, rtol=1e-5)
    assert jnp.allclose(out_eval, _ref(x, None, training=False), atol=1e-5, rtol=1e-5)

    # 2) Ragged shape — exercises the no-pad cdiv grid + full-extent (non-128) C block.
    N2, C2 = 10, 100
    x2 = jax.random.normal(kx2, (N2, C2), dtype=jnp.float32)
    out2 = jax.block_until_ready(gumbel_sigmoid(x2, knoise, training=True, use_pallas=True))
    assert out2.shape == (N2, C2)
    assert jnp.allclose(out2, _ref(x2, knoise, training=True), atol=1e-5, rtol=1e-5)

    # 3) Multi-block grid (>= 2 steps, megacore-shardable) with a ragged final block.
    N3, C3 = 1000, 512
    x3 = jax.random.normal(kx3, (N3, C3), dtype=jnp.float32)
    out3 = jax.block_until_ready(gumbel_sigmoid(x3, knoise, training=True, use_pallas=True))
    assert out3.shape == (N3, C3)
    assert jnp.allclose(out3, _ref(x3, knoise, training=True), atol=1e-5, rtol=1e-5)

    # 4) bf16 I/O — exercises 16-row tile alignment + tanh-form sigmoid.
    N4, C4 = 24, 128
    x4 = jax.random.normal(kx4, (N4, C4), dtype=jnp.float32).astype(jnp.bfloat16)
    out4 = jax.block_until_ready(gumbel_sigmoid(x4, knoise, training=True, use_pallas=True))
    ref4 = _ref(x4.astype(jnp.float32), knoise, training=True)
    assert out4.shape == (N4, C4)
    assert jnp.allclose(out4.astype(jnp.float32), ref4, atol=1e-2, rtol=1e-2)

    print("KERNEL_OK")
</pallas_src>

<mosaic_0001>
module attributes {stable_mosaic.version = 11 : i64} {
  func.func @_gumbel_sigmoid_train_kernel(%arg0: i32, %arg1: memref<16x128xf32, #tpu.memory_space<vmem>>, %arg2: memref<1x128xf32, #tpu.memory_space<vmem>>, %arg3: memref<16x128xf32, #tpu.memory_space<vmem>>) attributes {dimension_semantics = [#tpu.dimension_semantics<parallel>], iteration_bounds = array<i64: 1>, scalar_prefetch = 0 : i64, scratch_operands = 0 : i64, tpu.core_type = #tpu.core_type<tc>, window_params = [{transform_indices = @transform_0, window_bounds = array<i64: 16, 128>}, {pipeline_mode = #tpu.pipeline_mode<synchronous>, transform_indices = @transform_1, window_bounds = array<i64: 1, 128>}, {transform_indices = @transform_2, window_bounds = array<i64: 16, 128>}]} {
    %c0 = arith.constant 0 : index
    %c0_0 = arith.constant 0 : index
    %0 = vector.load %arg1[%c0, %c0_0] : memref<16x128xf32, #tpu.memory_space<vmem>>, vector<16x128xf32>
    %cst = arith.constant 2.500000e+00 : f32
    %1 = vector.broadcast %cst : f32 to vector<16x128xf32>
    %2 = arith.mulf %0, %1 : vector<16x128xf32>
    %c0_1 = arith.constant 0 : index
    %c0_2 = arith.constant 0 : index
    %3 = vector.load %arg2[%c0_1, %c0_2] : memref<1x128xf32, #tpu.memory_space<vmem>>, vector<1x128xf32>
    %4 = vector.broadcast %3 : vector<1x128xf32> to vector<16x128xf32>
    %5 = arith.addf %2, %4 : vector<16x128xf32>
    %6 = arith.negf %5 : vector<16x128xf32>
    %7 = math.exp %6 : vector<16x128xf32>
    %cst_3 = arith.constant 1.000000e+00 : f32
    %8 = vector.broadcast %cst_3 : f32 to vector<16x128xf32>
    %9 = arith.addf %8, %7 : vector<16x128xf32>
    %10 = arith.divf %8, %9 : vector<16x128xf32>
    %c0_4 = arith.constant 0 : index
    %c0_5 = arith.constant 0 : index
    %11 = vector.load %arg3[%c0_4, %c0_5] : memref<16x128xf32, #tpu.memory_space<vmem>>, vector<16x128xf32>
    tpu.vector_store %arg3[%c0_4, %c0_5], %10 {strides = array<i32>} : memref<16x128xf32, #tpu.memory_space<vmem>>, vector<16x128xf32>,
    return
  }
  func.func @transform_0(%arg0: i32) -> (i32, i32) {
    %c0_i32 = arith.constant 0 : i32
    %c0_i32_0 = arith.constant 0 : i32
    return %arg0, %c0_i32 : i32, i32
  }
  func.func @transform_1(%arg0: i32) -> (i32, i32) {
    %c0_i32 = arith.constant 0 : i32
    %c0_i32_0 = arith.constant 0 : i32
    %c0_i32_1 = arith.constant 0 : i32
    return %c0_i32, %c0_i32_0 : i32, i32
  }
  func.func @transform_2(%arg0: i32) -> (i32, i32) {
    %c0_i32 = arith.constant 0 : i32
    %c0_i32_0 = arith.constant 0 : i32
    return %arg0, %c0_i32 : i32, i32
  }
}

</mosaic_0001>

<bundles_post_ra>
// kernel: tpu_custom_call.1
= control target key start
LH: loop header
LB: loop body
LE: loop exit
PB: predicated region body
PF: predicated region fallthrough
CT: control target
= control target key end

     0   :  { %7 = vsyncpa [#allocation3], 0  ;;  %s241_s0 = inlined_call_operand.hbm [shape: f32[16,128], index: 0, kind: input, shape index: {}]   ;;  %s242_s1 = inlined_call_operand.hbm [shape: f32[1,128], index: 1, kind: input, shape index: {}]   ;;  %s243_s2 = inlined_call_operand.hbm [shape: f32[16,128], index: 2, kind: output, shape index: {}]  }
   0x1   :  { %8 = vsyncpa [#allocation6], 0 }
   0x2   :  { %9 = vsyncpa [#allocation4], 0  ;;  %s14_s11 = sshll.u32 %s241_s0, 4  ;;  %s206_s12 = smov [#allocation2]   ;;  %s15_s11 = int_to_ptr.hbm [resolvable:$true] %s14_s11 }
   0x3   :  { %s16_s13 = sshll.u32 %s206_s12, 4  ;;  %s28_s16 = sshll.u32 %s242_s1, 4  ;;  %s17_s13 = int_to_ptr.vmem [resolvable:$true] %s16_s13  ;;  %s29_s16 = int_to_ptr.hbm [resolvable:$true] %s28_s16 }
   0x4   :  { %s207_s17 = smov 128   ;;  %s208_s18 = smov 8  }
   0x5   :  { %22 = dma.hbm_to_vmem [thread:$0]  %s15_s11, 256, %s17_s13, [#allocation3], %s207_s17, %s207_s17, %s208_s18  }
   0x6   :  { %s209_s19 = smov [#allocation5]  }
   0x7   :  { %s30_s20 = sshll.u32 %s209_s19, 4  ;;  %s31_s20 = int_to_ptr.vmem [resolvable:$true] %s30_s20 }
   0x8   :  { %33 = dma.hbm_to_vmem [thread:$0]  %s29_s16, 16, %s31_s20, [#allocation6]  }
   0x9   :  { %200 = dma.done.wait [#allocation3], 256  }
   0xa   :  { %201 = vsyncadd [#allocation3], 4294967040 }
   0xb   :  { %202 = dma.done.wait [#allocation6], 16  }
   0xc   :  { %203 = vsyncadd [#allocation6], 4294967280  ;;  %v42_v0 = vld [vmem:[#allocation2] sm:$0xff]  ;;  %v119_v1 = vld [vmem:[#allocation5] ss:$0 sm:$0xff]  ;;  %s210_s0 = smov [#allocation7]  }
   0xd   :  { %v44_v2 = vmul.f32 2.5, %v42_v0  ;;  %v43_v3 = vld [vmem:[#allocation2 + $0x8] sm:$0xff]  ;;  %s96_s1 = sshll.u32 %s210_s0, 4  ;;  %s98_s23 = sshll.u32 %s243_s2, 4  ;;  %s97_s1 = int_to_ptr.vmem [resolvable:$true] %s96_s1  ;;  %s99_s23 = int_to_ptr.hbm [resolvable:$true] %s98_s23 }
   0xe   :  { %v45_v4 = vmul.f32 2.5, %v43_v3 }
   0xf   :  { %v50_v5 = vadd.f32 %v119_v1, %v44_v2 }
  0x10   :  { %v51_v6 = vadd.f32 %v119_v1, %v45_v4 }
  0x11   :  { %v112_v7 = vmul.f32 -1.442695, %v50_v5 }
  0x12   :  { %v113_v8 = vmul.f32 -1.442695, %v51_v6 }
  0x13   :  { %120 = vpow2.f32 %v112_v7 }
  0x14   :  { %122 = vpow2.f32 %v113_v8 }
  0x19   :  { %v121_v9 = vpop.eup %120 }
  0x1a   :  { %v123_v10 = vpop.eup %122  ;;  %v58_v11 = vadd.f32 1.0, %v121_v9 }
  0x1b   :  { %v59_v12 = vadd.f32 1.0, %v123_v10 }
  0x1c   :  { %124 = vrcp.f32 %v58_v11  ;;  %vm65_vm0 = vweird.f32 %v58_v11  ;;  %v71_v16 = vand.u32 2147483648, %v58_v11  ;;  %v69_v19 = vand.u32 2147483647, %v58_v11 }
  0x1d   :  { %126 = vrcp.f32 %v59_v12  ;;  %v86_v20 = vand.u32 2147483648, %v59_v12  ;;  %vm80_vm2 = vweird.f32 %v59_v12  ;;  %v84_v22 = vand.u32 2147483647, %v59_v12 }
  0x1e   :  { %v72_v24 = vor.u32 1.1754944e-38, %v71_v16  ;;  %vm70_vm5 = vcmp.eq.f32.partialorder %v69_v19, 8.507059e+37 }
  0x1f   :  { %v87_v27 = vor.u32 1.1754944e-38, %v86_v20  ;;  %vm85_vm7 = vcmp.eq.f32.partialorder %v84_v22, 8.507059e+37 }
  0x22   :  { %v125_v13 = vpop.eup %124 }
  0x23   :  { %v127_v14 = vpop.eup %126  ;;  %v61_v15 = vmul.f32 %v125_v13, %v58_v11  ;;  %vm66_vm1 = vweird.f32 %v125_v13 }
  0x24   :  { %v76_v17 = vmul.f32 %v127_v14, %v59_v12  ;;  %vm81_vm3 = vweird.f32 %v127_v14  ;;  %vm67_vm4 = vmor %vm65_vm0, %vm66_vm1 }
  0x25   :  { %v62_v18 = vsub.f32 1.0, %v61_v15  ;;  %vm82_vm6 = vmor %vm80_vm2, %vm81_vm3 }
  0x26   :  { %v77_v21 = vsub.f32 1.0, %v76_v17 }
  0x27   :  { %v63_v23 = vmul.f32 %v125_v13, %v62_v18 }
  0x28   :  { %v78_v25 = vmul.f32 %v127_v14, %v77_v21 }
  0x29   :  { %v64_v26 = vadd.f32 %v125_v13, %v63_v23 }
  0x2a   :  { %v79_v28 = vadd.f32 %v127_v14, %v78_v25 }
  0x2b   :  { %v68_v29 = vsel %vm67_vm4, %v125_v13, %v64_v26 }
  0x2c   :  { %v73_v30 = vsel %vm70_vm5, %v72_v24, %v68_v29  ;;  %v83_v31 = vsel %vm82_vm6, %v127_v14, %v79_v28 }
  0x2d   :  { %90 = vst [vmem:[#allocation7] sm:$0xff] %v73_v30  ;;  %v88_v32 = vsel %vm85_vm7, %v87_v27, %v83_v31 }
  0x2e   :  { %91 = vst [vmem:[#allocation7 + $0x8] sm:$0xff] %v88_v32 }
  0x2f   :  { %104 = dma.vmem_to_hbm [thread:$0]  %s97_s1, 256, %s99_s23, [#allocation4], %s207_s17, %s207_s17, %s208_s18  }
  0x30   :  { %204 = dma.done.wait [#allocation4], 256  }
  0x31   :  { %205 = vsyncadd [#allocation4], 4294967040 }
  0x32   :  { %109 = vsyncpa [#allocation3], 1 }
  0x33   :  { %110 = vsyncpa [#allocation6], 1 }
  0x34   :  { %111 = vsyncpa [#allocation4], 1 }

</bundles_post_ra>
